<compile_context>
chip_gen: v5e
topology: v5e:2x2
jax: 0.10.0
libtpu: 0.0.40
codegen_flags: <defaults>
</compile_context>

<pallas_src>
import functools
import math

import jax
import jax.numpy as jnp
from jax import lax
from jax.experimental import pallas as pl
from jax.experimental.pallas import tpu as pltpu


# --------------------------- fused MHA kernel --------------------------------
def _fused_mha_kernel(x_ref, wqkv_ref, wout_ref, o_ref,
                      qkvt_ref, stacked_ref, attn_ref, *, heads, scale):
    # Blocks: x_ref (1,S,D); wqkv_ref (3D,D); wout_ref (D,D); o_ref (1,S,D).
    # Scratch: qkvt_ref (3D,S); stacked_ref (H*S,Dh); attn_ref (S,D).
    S = x_ref.shape[1]
    D = x_ref.shape[2]
    dh = D // heads
    sub_hint = 8 if dh % 8 == 0 else 1

    # QKV projection stored transposed: qkvt[c, s] = sum_d wqkv[c, d] * x[s, d].
    # One fat MXU matmul (contraction D, output height 3D), weight in PyTorch
    # (out_features, in_features) layout -> no transposes anywhere.
    qkvt_ref[...] = lax.dot_general(
        wqkv_ref[...], x_ref[0],
        dimension_numbers=(((1,), (1,)), ((), ())),
        preferred_element_type=jnp.float32)

    # Per-head scaled-dot-product attention.  fori_loop (not a Python unroll)
    # bounds the (S, S) logits/probs live range to one head at a time.
    def _head(h, carry):
        base = h * dh
        if sub_hint > 1:
            base = pl.multiple_of(base, sub_hint)
        q_t = qkvt_ref[pl.ds(base, dh), :] * scale         # (Dh, S) = q_h^T * scale
        k_t = qkvt_ref[pl.ds(D + base, dh), :]             # (Dh, S) = k_h^T
        v_t = qkvt_ref[pl.ds(2 * D + base, dh), :]         # (Dh, S) = v_h^T

        # logits = (q * scale) @ k^T : contract Dh (dim 0 of both transposes).
        logits = lax.dot_general(q_t, k_t, (((0,), (0,)), ((), ())),
                                 preferred_element_type=jnp.float32)   # (S, S)
        m = jnp.max(logits, axis=-1, keepdims=True)
        p = jnp.exp(logits - m)
        l = jnp.sum(p, axis=-1, keepdims=True)
        # out_h = p @ v : contract the key axis (dim 1 of p, dim 1 of v^T).
        out_h = lax.dot_general(p, v_t, (((1,), (1,)), ((), ())),
                                preferred_element_type=jnp.float32)    # (S, Dh)
        # Exact reciprocal for parity with the f32 reference (approx=True would
        # move the divide to the otherwise-idle EUP slot at a tiny numeric cost).
        out_h = out_h * pl.reciprocal(l, approx=False)

        row = h * S
        if S % 8 == 0:
            row = pl.multiple_of(row, 8)
        stacked_ref[pl.ds(row, S), :] = out_h              # rows [h*S, (h+1)*S)
        return carry

    lax.fori_loop(0, heads, _head, 0)

    # Reference bug-compatibility: attention.view(B, S, H*Dh) on the contiguous
    # (B, H, S, Dh) tensor is a raw row-major reinterpretation.  In terms of the
    # h-major stacked buffer:  attn2d[:, q*Dh:(q+1)*Dh] = stacked[q::H, :].
    # H static sublane-strided reads + lane-offset stores, all inside VMEM.
    for qi in range(heads):
        attn_ref[:, qi * dh:(qi + 1) * dh] = (
            stacked_ref[pl.ds(qi, S, stride=heads), :])

    # Fused output projection (nn.Linear(D, D, bias=False), PyTorch (out, in)
    # weight layout): out = attn2d @ w_out^T.  Lane-dense (S, D) store.
    o_ref[0] = lax.dot_general(attn_ref[...], wout_ref[...],
                               (((1,), (1,)), ((), ())),
                               preferred_element_type=jnp.float32)


# ------------------------------ wrapper ---------------------------------------
def _vmem_limit_bytes():
    """~3/4 of physical VMEM: ~96 MiB on v5e/v6e (128 MiB), ~48 MiB on v7x (64 MiB)."""
    try:
        cap = int(pltpu.get_tpu_info().vmem_capacity_bytes)
    except Exception:
        cap = 64 * 1024 * 1024
    return max(32 * 1024 * 1024, (cap * 3) // 4)


def multihead_attention_forward(x, w_qkv, w_out, heads):
    """Forward pass of MultiHeadAttentionLayer (mask=None path).

    x:      (B, S, D) f32
    w_qkv:  (3D, D)   f32 -- PyTorch nn.Linear weight layout (out_features, in_features)
    w_out:  (D, D)    f32 -- PyTorch nn.Linear weight layout
    """
    B, S, D = x.shape
    assert D % heads == 0, "Dimension must be divisible by heads"
    assert w_qkv.shape == (3 * D, D) and w_out.shape == (D, D)
    dh = D // heads
    scale = 1.0 / math.sqrt(dh)

    kernel = functools.partial(_fused_mha_kernel, heads=heads, scale=scale)
    return pl.pallas_call(
        kernel,
        out_shape=jax.ShapeDtypeStruct((B, S, D), jnp.float32),
        grid=(B,),
        in_specs=[
            pl.BlockSpec((1, S, D), lambda b: (b, 0, 0)),
            # Constant block index -> weights stay resident in VMEM across the
            # whole grid (no per-step re-DMA).
            # TODO(synk): pipeline_mode=pl.Buffered(1) to drop the (never-used)
            # second pipeline buffer once large-D configs need the headroom.
            pl.BlockSpec((3 * D, D), lambda b: (0, 0)),
            pl.BlockSpec((D, D), lambda b: (0, 0)),
        ],
        out_specs=pl.BlockSpec((1, S, D), lambda b: (b, 0, 0)),
        scratch_shapes=[
            pltpu.VMEM((3 * D, S), jnp.float32),        # transposed QKV projection
            pltpu.VMEM((heads * S, dh), jnp.float32),   # per-head outputs, h-major rows
            pltpu.VMEM((S, D), jnp.float32),            # reinterpreted (S, H*Dh) slab
        ],
        compiler_params=pltpu.CompilerParams(
            dimension_semantics=("parallel",),
            vmem_limit_bytes=_vmem_limit_bytes()),
    )(x, w_qkv, w_out)


# ------------------------- pure-JAX reference ---------------------------------
def _reference_forward(x, w_qkv, w_out, heads):
    """Mirror of the PyTorch forward (mask=None), including the raw .view."""
    B, S, D = x.shape
    dh = D // heads
    hp = lax.Precision.HIGHEST
    qkv = jnp.einsum("bsd,od->bso", x, w_qkv, precision=hp)
    q, k, v = jnp.split(qkv, 3, axis=-1)
    q = q.reshape(B, S, heads, dh).transpose(0, 2, 1, 3)
    k = k.reshape(B, S, heads, dh).transpose(0, 2, 1, 3)
    v = v.reshape(B, S, heads, dh).transpose(0, 2, 1, 3)
    logits = jnp.einsum("bhqd,bhkd->bhqk", q, k, precision=hp) / math.sqrt(dh)
    p = jax.nn.softmax(logits, axis=-1)
    attn = jnp.einsum("bhqk,bhkd->bhqd", p, v, precision=hp)   # (B, H, S, Dh)
    # torch .view(B, S, H*Dh) on the contiguous tensor == raw row-major reshape.
    attn2d = attn.reshape(B, S, heads * dh)
    return jnp.einsum("bsd,od->bso", attn2d, w_out, precision=hp)


# --------------------------------- main ----------------------------------------
if __name__ == "__main__":
    # Small shapes consistent with the module (dimension % heads == 0).
    B, S, D, H = 2, 16, 64, 8

    key = jax.random.PRNGKey(0)
    kx, kq, ko = jax.random.split(key, 3)
    x = jax.random.normal(kx, (B, S, D), dtype=jnp.float32)

    # nn.Linear default init; weights kept in PyTorch (out, in) layout.
    bound = 1.0 / math.sqrt(D)
    w_qkv = jax.random.uniform(kq, (3 * D, D), minval=-bound, maxval=bound,
                               dtype=jnp.float32)
    w_out = jax.random.uniform(ko, (D, D), minval=-bound, maxval=bound,
                               dtype=jnp.float32)

    out = multihead_attention_forward(x, w_qkv, w_out, heads=H)
    out = jax.block_until_ready(out)
    assert out.shape == (B, S, D) and out.dtype == jnp.float32

    # Correctness self-check against the pure-JAX reference (tolerance covers
    # MXU f32 multi-pass rounding differences vs HIGHEST-precision XLA einsums).
    ref = _reference_forward(x, w_qkv, w_out, heads=H)
    err = float(jnp.max(jnp.abs(out - ref)))
    assert err < 2e-2, f"kernel mismatch vs reference: max|diff|={err}"

    print("KERNEL_OK")
</pallas_src>

<mosaic_0001>
module attributes {stable_mosaic.version = 11 : i64} {
  func.func @_fused_mha_kernel(%arg0: i32, %arg1: memref<1x16x64xf32, #tpu.memory_space<vmem>>, %arg2: memref<192x64xf32, #tpu.memory_space<vmem>>, %arg3: memref<64x64xf32, #tpu.memory_space<vmem>>, %arg4: memref<1x16x64xf32, #tpu.memory_space<vmem>>, %arg5: memref<192x16xf32, #tpu.memory_space<vmem>>, %arg6: memref<128x8xf32, #tpu.memory_space<vmem>>, %arg7: memref<16x64xf32, #tpu.memory_space<vmem>>) attributes {dimension_semantics = [#tpu.dimension_semantics<parallel>], iteration_bounds = array<i64: 2>, scalar_prefetch = 0 : i64, scratch_operands = 3 : i64, tpu.core_type = #tpu.core_type<tc>, window_params = [{transform_indices = @transform_0, window_bounds = array<i64: 1, 16, 64>}, {pipeline_mode = #tpu.pipeline_mode<synchronous>, transform_indices = @transform_1, window_bounds = array<i64: 192, 64>}, {pipeline_mode = #tpu.pipeline_mode<synchronous>, transform_indices = @transform_2, window_bounds = array<i64: 64, 64>}, {transform_indices = @transform_3, window_bounds = array<i64: 1, 16, 64>}]} {
    %c0 = arith.constant 0 : index
    %c0_0 = arith.constant 0 : index
    %0 = vector.load %arg2[%c0, %c0_0] : memref<192x64xf32, #tpu.memory_space<vmem>>, vector<192x64xf32>
    %c0_1 = arith.constant 0 : index
    %c0_2 = arith.constant 0 : index
    %c0_3 = arith.constant 0 : index
    %1 = vector.load %arg1[%c0_1, %c0_2, %c0_3] : memref<1x16x64xf32, #tpu.memory_space<vmem>>, vector<1x16x64xf32>
    %2 = vector.shape_cast %1 : vector<1x16x64xf32> to vector<16x64xf32>
    %cst = arith.constant dense<0.000000e+00> : vector<192x16xf32>
    %3 = tpu.matmul %0, %2, %cst {dimension_numbers = #tpu.dot_dimension_numbers<[1], [1], [0], [0], [0, 0, 1, 0], [], []>} : vector<192x64xf32>, vector<16x64xf32>, vector<192x16xf32> -> vector<192x16xf32>
    %c0_4 = arith.constant 0 : index
    %c0_5 = arith.constant 0 : index
    %4 = vector.load %arg5[%c0_4, %c0_5] : memref<192x16xf32, #tpu.memory_space<vmem>>, vector<192x16xf32>
    tpu.vector_store %arg5[%c0_4, %c0_5], %3 {strides = array<i32>} : memref<192x16xf32, #tpu.memory_space<vmem>>, vector<192x16xf32>,
    %c0_i32 = arith.constant 0 : i32
    %c8_i32 = arith.constant 8 : i32
    %5 = arith.addi %c0_i32, %c8_i32 : i32
    %c1_i32 = arith.constant 1 : i32
    scf.for %arg8 = %c0_i32 to %5 step %c1_i32  : i32 {
      %c8_i32_33 = arith.constant 8 : i32
      %28 = arith.muli %arg8, %c8_i32_33 : i32
      %29 = tpu.assume_multiple %28, 8 : i32
      %30 = arith.index_cast %29 : i32 to index
      %c0_34 = arith.constant 0 : index
      %31 = vector.load %arg5[%30, %c0_34] : memref<192x16xf32, #tpu.memory_space<vmem>>, vector<8x16xf32>
      %cst_35 = arith.constant 0.353553385 : f32
      %32 = vector.broadcast %cst_35 : f32 to vector<8x16xf32>
      %33 = arith.mulf %31, %32 : vector<8x16xf32>
      %c64_i32 = arith.constant 64 : i32
      %34 = arith.addi %c64_i32, %29 : i32
      %35 = arith.index_cast %34 : i32 to index
      %c0_36 = arith.constant 0 : index
      %36 = vector.load %arg5[%35, %c0_36] : memref<192x16xf32, #tpu.memory_space<vmem>>, vector<8x16xf32>
      %c128_i32 = arith.constant 128 : i32
      %37 = arith.addi %c128_i32, %29 : i32
      %38 = arith.index_cast %37 : i32 to index
      %c0_37 = arith.constant 0 : index
      %39 = vector.load %arg5[%38, %c0_37] : memref<192x16xf32, #tpu.memory_space<vmem>>, vector<8x16xf32>
      %cst_38 = arith.constant dense<0.000000e+00> : vector<16x16xf32>
      %40 = tpu.matmul %33, %36, %cst_38 {dimension_numbers = #tpu.dot_dimension_numbers<[0], [0], [1], [1], [0, 1, 1, 1], [], []>} : vector<8x16xf32>, vector<8x16xf32>, vector<16x16xf32> -> vector<16x16xf32>
      %cst_39 = arith.constant dense<0xFF800000> : vector<16xf32>
      %41 = vector.multi_reduction <maximumf>, %40, %cst_39 [1] : vector<16x16xf32> to vector<16xf32>
      %42 = vector.shape_cast %41 : vector<16xf32> to vector<16x1xf32>
      %43 = vector.broadcast %42 : vector<16x1xf32> to vector<16x16xf32>
      %44 = arith.subf %40, %43 : vector<16x16xf32>
      %45 = math.exp %44 : vector<16x16xf32>
      %cst_40 = arith.constant dense<0.000000e+00> : vector<16xf32>
      %46 = vector.multi_reduction <add>, %45, %cst_40 [1] : vector<16x16xf32> to vector<16xf32>
      %47 = vector.shape_cast %46 : vector<16xf32> to vector<16x1xf32>
      %cst_41 = arith.constant dense<0.000000e+00> : vector<16x8xf32>
      %48 = tpu.matmul %45, %39, %cst_41 {dimension_numbers = #tpu.dot_dimension_numbers<[1], [1], [0], [0], [0, 0, 1, 0], [], []>} : vector<16x16xf32>, vector<8x16xf32>, vector<16x8xf32> -> vector<16x8xf32>
      %49 = tpu.reciprocal %47 : vector<16x1xf32> -> vector<16x1xf32>
      %50 = vector.broadcast %49 : vector<16x1xf32> to vector<16x8xf32>
      %51 = arith.mulf %48, %50 : vector<16x8xf32>
      %c16_i32 = arith.constant 16 : i32
      %52 = arith.muli %arg8, %c16_i32 : i32
      %53 = tpu.assume_multiple %52, 8 : i32
      %54 = arith.index_cast %53 : i32 to index
      %c0_42 = arith.constant 0 : index
      %55 = vector.load %arg6[%54, %c0_42] : memref<128x8xf32, #tpu.memory_space<vmem>>, vector<16x8xf32>
      tpu.vector_store %arg6[%54, %c0_42], %51 {strides = array<i32>} : memref<128x8xf32, #tpu.memory_space<vmem>>, vector<16x8xf32>,
    }
    %c8_i32_6 = arith.constant 8 : i32
    %c0_7 = arith.constant 0 : index
    %c0_8 = arith.constant 0 : index
    %6 = tpu.strided_load %arg6[%c0_7, %c0_8] {strides = array<i32: 8, 1>} : memref<128x8xf32, #tpu.memory_space<vmem>>, vector<16x8xf32>
    %c0_9 = arith.constant 0 : index
    %c0_10 = arith.constant 0 : index
    %7 = vector.load %arg7[%c0_9, %c0_10] : memref<16x64xf32, #tpu.memory_space<vmem>>, vector<16x8xf32>
    tpu.vector_store %arg7[%c0_9, %c0_10], %6 {strides = array<i32>} : memref<16x64xf32, #tpu.memory_space<vmem>>, vector<16x8xf32>,
    %c1 = arith.constant 1 : index
    %c0_11 = arith.constant 0 : index
    %8 = tpu.strided_load %arg6[%c1, %c0_11] {strides = array<i32: 8, 1>} : memref<128x8xf32, #tpu.memory_space<vmem>>, vector<16x8xf32>
    %c0_12 = arith.constant 0 : index
    %c8 = arith.constant 8 : index
    %9 = vector.load %arg7[%c0_12, %c8] : memref<16x64xf32, #tpu.memory_space<vmem>>, vector<16x8xf32>
    tpu.vector_store %arg7[%c0_12, %c8], %8 {strides = array<i32>} : memref<16x64xf32, #tpu.memory_space<vmem>>, vector<16x8xf32>,
    %c2 = arith.constant 2 : index
    %c0_13 = arith.constant 0 : index
    %10 = tpu.strided_load %arg6[%c2, %c0_13] {strides = array<i32: 8, 1>} : memref<128x8xf32, #tpu.memory_space<vmem>>, vector<16x8xf32>
    %c0_14 = arith.constant 0 : index
    %c16 = arith.constant 16 : index
    %11 = vector.load %arg7[%c0_14, %c16] : memref<16x64xf32, #tpu.memory_space<vmem>>, vector<16x8xf32>
    tpu.vector_store %arg7[%c0_14, %c16], %10 {strides = array<i32>} : memref<16x64xf32, #tpu.memory_space<vmem>>, vector<16x8xf32>,
    %c3 = arith.constant 3 : index
    %c0_15 = arith.constant 0 : index
    %12 = tpu.strided_load %arg6[%c3, %c0_15] {strides = array<i32: 8, 1>} : memref<128x8xf32, #tpu.memory_space<vmem>>, vector<16x8xf32>
    %c0_16 = arith.constant 0 : index
    %c24 = arith.constant 24 : index
    %13 = vector.load %arg7[%c0_16, %c24] : memref<16x64xf32, #tpu.memory_space<vmem>>, vector<16x8xf32>
    tpu.vector_store %arg7[%c0_16, %c24], %12 {strides = array<i32>} : memref<16x64xf32, #tpu.memory_space<vmem>>, vector<16x8xf32>,
    %c4 = arith.constant 4 : index
    %c0_17 = arith.constant 0 : index
    %14 = tpu.strided_load %arg6[%c4, %c0_17] {strides = array<i32: 8, 1>} : memref<128x8xf32, #tpu.memory_space<vmem>>, vector<16x8xf32>
    %c0_18 = arith.constant 0 : index
    %c32 = arith.constant 32 : index
    %15 = vector.load %arg7[%c0_18, %c32] : memref<16x64xf32, #tpu.memory_space<vmem>>, vector<16x8xf32>
    tpu.vector_store %arg7[%c0_18, %c32], %14 {strides = array<i32>} : memref<16x64xf32, #tpu.memory_space<vmem>>, vector<16x8xf32>,
    %c5 = arith.constant 5 : index
    %c0_19 = arith.constant 0 : index
    %16 = tpu.strided_load %arg6[%c5, %c0_19] {strides = array<i32: 8, 1>} : memref<128x8xf32, #tpu.memory_space<vmem>>, vector<16x8xf32>
    %c0_20 = arith.constant 0 : index
    %c40 = arith.constant 40 : index
    %17 = vector.load %arg7[%c0_20, %c40] : memref<16x64xf32, #tpu.memory_space<vmem>>, vector<16x8xf32>
    tpu.vector_store %arg7[%c0_20, %c40], %16 {strides = array<i32>} : memref<16x64xf32, #tpu.memory_space<vmem>>, vector<16x8xf32>,
    %c6 = arith.constant 6 : index
    %c0_21 = arith.constant 0 : index
    %18 = tpu.strided_load %arg6[%c6, %c0_21] {strides = array<i32: 8, 1>} : memref<128x8xf32, #tpu.memory_space<vmem>>, vector<16x8xf32>
    %c0_22 = arith.constant 0 : index
    %c48 = arith.constant 48 : index
    %19 = vector.load %arg7[%c0_22, %c48] : memref<16x64xf32, #tpu.memory_space<vmem>>, vector<16x8xf32>
    tpu.vector_store %arg7[%c0_22, %c48], %18 {strides = array<i32>} : memref<16x64xf32, #tpu.memory_space<vmem>>, vector<16x8xf32>,
    %c7 = arith.constant 7 : index
    %c0_23 = arith.constant 0 : index
    %20 = tpu.strided_load %arg6[%c7, %c0_23] {strides = array<i32: 8, 1>} : memref<128x8xf32, #tpu.memory_space<vmem>>, vector<16x8xf32>
    %c0_24 = arith.constant 0 : index
    %c56 = arith.constant 56 : index
    %21 = vector.load %arg7[%c0_24, %c56] : memref<16x64xf32, #tpu.memory_space<vmem>>, vector<16x8xf32>
    tpu.vector_store %arg7[%c0_24, %c56], %20 {strides = array<i32>} : memref<16x64xf32, #tpu.memory_space<vmem>>, vector<16x8xf32>,
    %c0_25 = arith.constant 0 : index
    %c0_26 = arith.constant 0 : index
    %22 = vector.load %arg7[%c0_25, %c0_26] : memref<16x64xf32, #tpu.memory_space<vmem>>, vector<16x64xf32>
    %c0_27 = arith.constant 0 : index
    %c0_28 = arith.constant 0 : index
    %23 = vector.load %arg3[%c0_27, %c0_28] : memref<64x64xf32, #tpu.memory_space<vmem>>, vector<64x64xf32>
    %cst_29 = arith.constant dense<0.000000e+00> : vector<16x64xf32>
    %24 = tpu.matmul %22, %23, %cst_29 {dimension_numbers = #tpu.dot_dimension_numbers<[1], [1], [0], [0], [0, 0, 1, 0], [], []>} : vector<16x64xf32>, vector<64x64xf32>, vector<16x64xf32> -> vector<16x64xf32>
    %c0_30 = arith.constant 0 : index
    %c0_31 = arith.constant 0 : index
    %c0_32 = arith.constant 0 : index
    %25 = vector.load %arg4[%c0_30, %c0_31, %c0_32] : memref<1x16x64xf32, #tpu.memory_space<vmem>>, vector<1x16x64xf32>
    %26 = vector.shape_cast %25 : vector<1x16x64xf32> to vector<16x64xf32>
    %27 = vector.shape_cast %24 : vector<16x64xf32> to vector<1x16x64xf32>
    tpu.vector_store %arg4[%c0_30, %c0_31, %c0_32], %27 {strides = array<i32>} : memref<1x16x64xf32, #tpu.memory_space<vmem>>, vector<1x16x64xf32>,
    return
  }
  func.func @transform_0(%arg0: i32) -> (i32, i32, i32) {
    %c0_i32 = arith.constant 0 : i32
    %c0_i32_0 = arith.constant 0 : i32
    %c0_i32_1 = arith.constant 0 : i32
    return %arg0, %c0_i32, %c0_i32_0 : i32, i32, i32
  }
  func.func @transform_1(%arg0: i32) -> (i32, i32) {
    %c0_i32 = arith.constant 0 : i32
    %c0_i32_0 = arith.constant 0 : i32
    %c0_i32_1 = arith.constant 0 : i32
    return %c0_i32, %c0_i32_0 : i32, i32
  }
  func.func @transform_2(%arg0: i32) -> (i32, i32) {
    %c0_i32 = arith.constant 0 : i32
    %c0_i32_0 = arith.constant 0 : i32
    %c0_i32_1 = arith.constant 0 : i32
    return %c0_i32, %c0_i32_0 : i32, i32
  }
  func.func @transform_3(%arg0: i32) -> (i32, i32, i32) {
    %c0_i32 = arith.constant 0 : i32
    %c0_i32_0 = arith.constant 0 : i32
    %c0_i32_1 = arith.constant 0 : i32
    return %arg0, %c0_i32, %c0_i32_0 : i32, i32, i32
  }
}

</mosaic_0001>

<bundles_post_ra>
// kernel: tpu_custom_call.1
= control target key start
LH: loop header
LB: loop body
LE: loop exit
PB: predicated region body
PF: predicated region fallthrough
CT: control target
= control target key end

     0   :  { %8 = vsyncpa [#allocation6], 0  ;;  %s1392_s0 = inlined_call_operand.vmem [shape: f32[2,16,64], index: 0, kind: input, shape index: {}]   ;;  %s1393_s1 = inlined_call_operand.vmem [shape: f32[192,64], index: 1, kind: input, shape index: {}]   ;;  %s1394_s2 = inlined_call_operand.vmem [shape: f32[64,64], index: 2, kind: input, shape index: {}]   ;;  %s1395_s3 = inlined_call_operand.hbm [shape: f32[2,16,64], index: 3, kind: output, shape index: {}]  }
   0x1   :  { %10 = vsyncpa [#allocation6 + $0x1], 0  ;;  %s1092_s12 = smov 0   ;;  %s1094_s13 = smov 0  }
   0x2   :  { %s1096_s14 = smov 0   ;;  %s1098_s15 = smov 0  }
   0x3 LB: > { %s1113_s16 = sadd.s32 4294967295, %s1058_s15   ;;  %s851_s17 = sadd.s32 4294967294, %s1058_s15   ;;  %s1058_s15 = sphi %s1098_s15, %s1401_s15   ;;  %s1054_s14 = sphi %s1096_s14, %s1400_s14   ;;  %s1050_s13 = sphi %s1094_s13, %s1399_s13   ;;  %s1046_s12 = sphi %s1092_s12, %s1398_s12  }
   0x4   : > { %s1117_s18 = sadd.s32 1, %s1058_s15   ;;  %s91_s19 = sadd.s32 1, %s1054_s14 }
   0x5   : > { %s88_s20 = ssub.s32 %s1058_s15, %s1117_s18  ;;  %p101_p0 = scmp.ne.s32.totalorder %s1054_s14, %s1050_s13 }
   0x6   : > { %p89_p1 = scmp.eq.s32.totalorder %s88_s20, 0  ;;  %p102_p2 = scmp.eq.s32.totalorder %s1113_s16, 1 }
   0x7   : > { %p107_p3 = scmp.ne.s32.totalorder %s1050_s13, %s1046_s12  ;;  %p108_p4 = scmp.eq.s32.totalorder %s851_s17, 1 }
   0x8   : > { %s1128_s21 = scalar_select %p89_p1, %s1054_s14, %s91_s19  }
   0x9   : > { %p1130_p5 = por %p102_p2, %p101_p0  ;;  %p1134_p6 = por %p108_p4, %p107_p3 }
   0xa   : > { %p854_p7 = scmp.ge.s32.totalorder %s1058_s15, 1  ;;  %p140_p8 = scmp.lt.s32.totalorder %s1058_s15, 3 }
   0xc   : > { %p141_p9 = pnand %p854_p7, %p140_p8 }
   0xd   : > { %p164_p10 = scmp.lt.s32.totalorder (!%p141_p9), %s1113_s16, 1  ;;  %s161_s24 = sand.u32 (!%p141_p9), 1, %s1050_s13  }
   0xe   : > { %144 = sbr.rel (%p141_p9) target bundleno = 1080 (0x438), region = 32  ;;  %s1144_s25 = sshll.u32 (!%p141_p9), %s161_s24, 4 }
   0xf   : > { %s1279_s4 = scalar_lea.vmem (!%p141_p9), [#allocation5], %s1144_s25  ;;  %s1281_s5 = smov (!%p141_p9), 0  }
  0x13   : > { %s165_s26 = scalar_select %p164_p10, %s1113_s16, 1  ;;  %vm195_vm0 = vcmask 523264   ;;  %v181_v2 = vld [vmem:[%s1393_s1 + $0x60] sm:$0xff]  ;;  %v187_v3 = vld [vmem:[%s1393_s1 + $0x90] sm:$0xff]  ;;  %v182_v6 = vld [vmem:[%s1393_s1 + $0x68] sm:$0xff]  ;;  %vm363_vm1 = vcmask 130048  }
  0x14   : > { %v169_v4 = vld [vmem:[%s1393_s1] sm:$0xff]  ;;  %v175_v5 = vld [vmem:[%s1393_s1 + $0x30] sm:$0xff]  ;;  %v188_v7 = vld [vmem:[%s1393_s1 + $0x98] sm:$0xff] }
  0x15   : > { %s910_s27 = sshll.u32 %s165_s26, 4  ;;  %v170_v8 = vld [vmem:[%s1393_s1 + $0x8] sm:$0xff]  ;;  %v176_v9 = vld [vmem:[%s1393_s1 + $0x38] sm:$0xff]  ;;  %v183_v10 = vld [vmem:[%s1393_s1 + $0x70] sm:$0xff] }
  0x16   : > { %s168_s30 = scalar_lea.vmem %s1392_s0, %s910_s27  ;;  %v189_v11 = vld [vmem:[%s1393_s1 + $0xa0] sm:$0xff]  ;;  %v171_v12 = vld [vmem:[%s1393_s1 + $0x10] sm:$0xff]  ;;  %v184_v14 = vld [vmem:[%s1393_s1 + $0x78] sm:$0xff] }
  0x17   : > { %v194_v0 = vld [vmem:[%s168_s30 + $0x8] sm:$0xff]  ;;  %v193_v1 = vld [vmem:[%s168_s30] sm:$0xff]  ;;  %v172_v16 = vld [vmem:[%s1393_s1 + $0x18] sm:$0xff] }
  0x18   : > { %913 = vmatpush.xpose.msk.msra.mxu2 %vm195_vm0, %v194_v0  ;;  %914 = vmatpush.xpose.msk.msra.mxu3 %vm195_vm0, %v194_v0  ;;  %v177_v13 = vld [vmem:[%s1393_s1 + $0x40] sm:$0xff]  ;;  %v190_v15 = vld [vmem:[%s1393_s1 + $0xa8] sm:$0xff]  ;;  %v191_v19 = vld [vmem:[%s1393_s1 + $0xb0] sm:$0xff] }
  0x19   : > { %858 = vmatpush.xpose.msk.msra.mxu0 %vm195_vm0, %v194_v0  ;;  %912 = vmatpush.xpose.msk.msra.mxu1 %vm195_vm0, %v194_v0  ;;  %v178_v17 = vld [vmem:[%s1393_s1 + $0x48] sm:$0xff]  ;;  %v185_v18 = vld [vmem:[%s1393_s1 + $0x80] sm:$0xff]  ;;  %v179_v21 = vld [vmem:[%s1393_s1 + $0x50] sm:$0xff] }
  0x1a   : > { %v173_v20 = vld [vmem:[%s1393_s1 + $0x20] sm:$0xff]  ;;  %v186_v22 = vld [vmem:[%s1393_s1 + $0x88] sm:$0xff]  ;;  %v192_v23 = vld [vmem:[%s1393_s1 + $0xb8] sm:$0xff] }
  0x1b   : > { %v174_v24 = vld [vmem:[%s1393_s1 + $0x28] sm:$0xff]  ;;  %v180_v25 = vld [vmem:[%s1393_s1 + $0x58] sm:$0xff] }
  0x1c   : > { %916 = vmatpush.xpose.msk.msra.mxu2 %vm195_vm0, %v193_v1  ;;  %917 = vmatpush.xpose.msk.msra.mxu3 %vm195_vm0, %v193_v1 }
  0x1d   : > { %859 = vmatpush.xpose.msk.msra.mxu0 %vm195_vm0, %v193_v1  ;;  %915 = vmatpush.xpose.msk.msra.mxu1 %vm195_vm0, %v193_v1 }
  0x1f   : > { %872 = vmatmul.msk.f32.vlgmr.msra.gmra.mxu2 %vm195_vm0, %v181_v2  ;;  %878 = vmatmul.msk.f32.vlgmr.msra.gmra.mxu3 %vm195_vm0, %v187_v3 }
  0x20   : > { %860 = vmatmul.msk.f32.vlgmr.msra.gmra.mxu0 %vm195_vm0, %v169_v4  ;;  %866 = vmatmul.msk.f32.vlgmr.msra.gmra.mxu1 %vm195_vm0, %v175_v5 }
  0x27   : > { %873 = vmatmul.msk.f32.gmra.mxu2 %vm195_vm0, %v182_v6  ;;  %879 = vmatmul.msk.f32.gmra.mxu3 %vm195_vm0, %v188_v7 }
  0x28   : > { %861 = vmatmul.msk.f32.gmra.mxu0 %vm195_vm0, %v170_v8  ;;  %867 = vmatmul.msk.f32.gmra.mxu1 %vm195_vm0, %v176_v9 }
  0x2f   : > { %874 = vmatmul.msk.f32.gmra.mxu2 %vm195_vm0, %v183_v10  ;;  %880 = vmatmul.msk.f32.gmra.mxu3 %vm195_vm0, %v189_v11 }
  0x30   : > { %862 = vmatmul.msk.f32.gmra.mxu0 %vm195_vm0, %v171_v12  ;;  %868 = vmatmul.msk.f32.gmra.mxu1 %vm195_vm0, %v177_v13 }
  0x37   : > { %875 = vmatmul.msk.f32.gmra.mxu2 %vm195_vm0, %v184_v14  ;;  %881 = vmatmul.msk.f32.gmra.mxu3 %vm195_vm0, %v190_v15 }
  0x38   : > { %863 = vmatmul.msk.f32.gmra.mxu0 %vm195_vm0, %v172_v16  ;;  %869 = vmatmul.msk.f32.gmra.mxu1 %vm195_vm0, %v178_v17 }
  0x3f   : > { %876 = vmatmul.msk.f32.gmra.mxu2 %vm195_vm0, %v185_v18  ;;  %882 = vmatmul.msk.f32.gmra.mxu3 %vm195_vm0, %v191_v19 }
  0x40   : > { %864 = vmatmul.msk.f32.gmra.mxu0 %vm195_vm0, %v173_v20  ;;  %870 = vmatmul.msk.f32.gmra.mxu1 %vm195_vm0, %v179_v21 }
  0x47   : > { %877 = vmatmul.msk.f32.gmra.mxu2 %vm195_vm0, %v186_v22  ;;  %883 = vmatmul.msk.f32.gmra.mxu3 %vm195_vm0, %v192_v23 }
  0x48   : > { %865 = vmatmul.msk.f32.gmra.mxu0 %vm195_vm0, %v174_v24  ;;  %871 = vmatmul.msk.f32.gmra.mxu1 %vm195_vm0, %v180_v25 }
  0x9d   : > { %v291_v26 = vpop.f32.mrf.mxu0  ;;  %v309_v27 = vpop.f32.mrf.mxu1 }
  0x9e   : > { %364 = vst.msk [vmem:[#allocation2] sm:$0xff] %vm363_vm1, %v291_v26 }
  0x9f   : > { %370 = vst.msk [vmem:[#allocation2 + $0x30] sm:$0xff] %vm363_vm1, %v309_v27 }
  0xa2   : > { %v327_v28 = vpop.f32.mrf.mxu2  ;;  %v345_v29 = vpop.f32.mrf.mxu3 }
  0xa3   : > { %376 = vst.msk [vmem:[#allocation2 + $0x60] sm:$0xff] %vm363_vm1, %v327_v28 }
  0xa4   : > { %382 = vst.msk [vmem:[#allocation2 + $0x90] sm:$0xff] %vm363_vm1, %v345_v29 }
  0xa5   : > { %v294_v30 = vpop.f32.mrf.mxu0  ;;  %v312_v31 = vpop.f32.mrf.mxu1 }
  0xa6   : > { %365 = vst.msk [vmem:[#allocation2 + $0x8] sm:$0xff] %vm363_vm1, %v294_v30 }
  0xa7   : > { %371 = vst.msk [vmem:[#allocation2 + $0x38] sm:$0xff] %vm363_vm1, %v312_v31 }
  0xaa   : > { %v330_v32 = vpop.f32.mrf.mxu2  ;;  %v348_v33 = vpop.f32.mrf.mxu3 }
  0xab   : > { %377 = vst.msk [vmem:[#allocation2 + $0x68] sm:$0xff] %vm363_vm1, %v330_v32 }
  0xac   : > { %383 = vst.msk [vmem:[#allocation2 + $0x98] sm:$0xff] %vm363_vm1, %v348_v33 }
  0xad   : > { %v297_v34 = vpop.f32.mrf.mxu0  ;;  %v315_v35 = vpop.f32.mrf.mxu1 }
  0xae   : > { %366 = vst.msk [vmem:[#allocation2 + $0x10] sm:$0xff] %vm363_vm1, %v297_v34 }
  0xaf   : > { %372 = vst.msk [vmem:[#allocation2 + $0x40] sm:$0xff] %vm363_vm1, %v315_v35 }
  0xb2   : > { %v333_v36 = vpop.f32.mrf.mxu2  ;;  %v351_v37 = vpop.f32.mrf.mxu3 }
  0xb3   : > { %378 = vst.msk [vmem:[#allocation2 + $0x70] sm:$0xff] %vm363_vm1, %v333_v36 }
  0xb4   : > { %384 = vst.msk [vmem:[#allocation2 + $0xa0] sm:$0xff] %vm363_vm1, %v351_v37 }
  0xb5   : > { %v300_v38 = vpop.f32.mrf.mxu0  ;;  %v318_v39 = vpop.f32.mrf.mxu1 }
  0xb6   : > { %367 = vst.msk [vmem:[#allocation2 + $0x18] sm:$0xff] %vm363_vm1, %v300_v38 }
  0xb7   : > { %373 = vst.msk [vmem:[#allocation2 + $0x48] sm:$0xff] %vm363_vm1, %v318_v39 }
  0xba   : > { %v336_v40 = vpop.f32.mrf.mxu2  ;;  %v354_v41 = vpop.f32.mrf.mxu3 }
  0xbb   : > { %379 = vst.msk [vmem:[#allocation2 + $0x78] sm:$0xff] %vm363_vm1, %v336_v40 }
  0xbc   : > { %385 = vst.msk [vmem:[#allocation2 + $0xa8] sm:$0xff] %vm363_vm1, %v354_v41 }
  0xbd   : > { %v303_v42 = vpop.f32.mrf.mxu0  ;;  %v321_v43 = vpop.f32.mrf.mxu1 }
  0xbe   : > { %368 = vst.msk [vmem:[#allocation2 + $0x20] sm:$0xff] %vm363_vm1, %v303_v42 }
  0xbf   : > { %374 = vst.msk [vmem:[#allocation2 + $0x50] sm:$0xff] %vm363_vm1, %v321_v43 }
  0xc2   : > { %v339_v44 = vpop.f32.mrf.mxu2  ;;  %v357_v45 = vpop.f32.mrf.mxu3 }
  0xc3   : > { %380 = vst.msk [vmem:[#allocation2 + $0x80] sm:$0xff] %vm363_vm1, %v339_v44 }
  0xc4   : > { %386 = vst.msk [vmem:[#allocation2 + $0xb0] sm:$0xff] %vm363_vm1, %v357_v45 }
  0xc5   : > { %v306_v46 = vpop.f32.mrf.mxu0  ;;  %v324_v47 = vpop.f32.mrf.mxu1 }
  0xc6   : > { %369 = vst.msk [vmem:[#allocation2 + $0x28] sm:$0xff] %vm363_vm1, %v306_v46 }
  0xc7   : > { %375 = vst.msk [vmem:[#allocation2 + $0x58] sm:$0xff] %vm363_vm1, %v324_v47 }
  0xca   : > { %v342_v48 = vpop.f32.mrf.mxu2  ;;  %v360_v49 = vpop.f32.mrf.mxu3 }
  0xcb   : > { %381 = vst.msk [vmem:[#allocation2 + $0x88] sm:$0xff] %vm363_vm1, %v342_v48 }
  0xcc   : > { %387 = vst.msk [vmem:[#allocation2 + $0xb8] sm:$0xff] %vm363_vm1, %v360_v49 }
  0xcd LB: >> { %s884_s6 = sshll.u32 %s1062_s5, 3  ;;  %vm436_vm2 = vcmask 64512   ;;  %s894_s25 = sshll.u32 %s1062_s5, 4  ;;  %s1062_s5 = sphi %s1281_s5, %s393_s5  }
  0xce   : >> { %s395_s7 = scalar_lea.vmem [#allocation2], %s884_s6  ;;  %s547_s8 = scalar_lea.vmem [#allocation3], %s894_s25 }
  0xcf   : >> { %s393_s5 = sadd.s32 1, %s1062_s5  }
  0xd0   : >> { %p390_p11 = scmp.ge.s32.totalorder %s393_s5, 8  }
  0xd1   : > { %s1064_s9 = smov (%p390_p11), 16   ;;  %s1065_s10 = smov (%p390_p11), 8   ;;  %vm576_vm11 = vcmask (%p390_p11), 130112   ;;  %vm595_vm12 = vcmask (%p390_p11), 195712   ;;  %vm614_vm13 = vcmask (%p390_p11), 261312   ;;  %vm633_vm14 = vcmask (%p390_p11), 326912  }
  0xd2   : > { %s1066_s11 = smov (%p390_p11), 24   ;;  %s1067_s17 = smov (%p390_p11), 32   ;;  %vm652_vm15 = vcmask (%p390_p11), 392512  }
  0xd3   : >> { %v396_v50 = vld [vmem:[%s395_s7] sm:$0xff]  ;;  %s1068_s19 = smov (%p390_p11), 48   ;;  %s1069_s20 = smov (%p390_p11), 40  }
  0xd4   : >> { %v886_v51 = vld [vmem:[%s395_s7 + $0x40] sm:$0xff]  ;;  %v397_v52 = vmul.f32 0.35355338, %v396_v50  ;;  %s1070_s26 = smov (%p390_p11), 56   ;;  %s911_s28 = sshll.u32 (%p390_p11), %s1113_s16, 4 }
  0xd5   : >> { %458 = vmatpush.msra.mxu0 %v886_v51  ;;  %918 = vmatpush.msra.mxu3 %v886_v51  ;;  %v888_v59 = vld [vmem:[%s395_s7 + $0x80] sm:$0xff]  ;;  %s770_s5 = scalar_lea.hbm (%p390_p11), %s1395_s3, %s911_s28  ;;  %s771_s6 = sshll.u32 (%p390_p11), %s1279_s4, 4  ;;  %s772_s6 = int_to_ptr.vmem [resolvable:$true] %s771_s6 }
  0xd6   : >> { %404 = vxpose.xlu0.b32.start.end [1/1] (short) (narrow) %v397_v52, 16  ;;  %891 = vmatpush.xpose.msk.msra.mxu1 %vm363_vm1, %v888_v59  ;;  %s773_s7 = sshll.u32 (%p390_p11), %s770_s5, 4  ;;  %s759_s25 = scalar_lea.sflag (%p390_p11), [#allocation6], %s161_s24  ;;  %s774_s7 = int_to_ptr.hbm [resolvable:$true] %s773_s7 }
  0xd7   : >> { %919 = vmatpush.xpose.msk.msra.mxu2 %vm363_vm1, %v888_v59 }
 0x17a   : >> { %v420_v53 = vpop.trf.xlu0 }
 0x17b   : >> { %889 = vmatmul.msk.f32.vlgmr.msra.gmra.mxu0 %vm436_vm2, %v420_v53 }
 0x182   : >> { %v421_v54 = vpop.trf.xlu0 }
 0x183   : >> { %890 = vmatmul.msk.f32.vlgmr.msra.gmra.mxu3 %vm436_vm2, %v421_v54 }
 0x1f8   : >> { %v460_v55 = vpop.f32.mrf.mxu0 }
 0x1f9   : >> { %v466_v56 = vsel %vm363_vm1, %v460_v55, -inf }
 0x1fa   : >> { %467 = vmax.xlane.f32.xlu1 %v466_v56 }
 0x206   : >> { %v463_v57 = vpop.f32.mrf.mxu3 }
 0x207   : >> { %v469_v58 = vsel %vm363_vm1, %v463_v57, -inf }
 0x208   : >> { %470 = vmax.xlane.f32.xlu0 %v469_v58 }
 0x26d   : >> { %v468_v60 = vpop.xlane.xlu1 %467 }
 0x26e   : >> { %v472_v61 = vsub.f32 %v460_v55, %v468_v60 }
 0x270   : >> { %v474_v62 = vmul.f32 1.442695, %v472_v61 }
 0x272   : >> { %984 = vpow2.f32 %v474_v62 }
 0x278   : >> { %v985_v63 = vpop.eup %984 }
 0x279   : >> { %892 = vmatmul.msk.f32.vlgmr.msra.gmra.mxu1 %vm363_vm1, %v985_v63  ;;  %v478_v0 = vsel %vm363_vm1, %v985_v63, 0.0 }
 0x27a   : >> { %479 = vadd.xlane.f32.xlu1 %v478_v0 }
 0x27b   : >> { %v471_v1 = vpop.xlane.xlu0 %470 }
 0x27c   : >> { %v473_v2 = vsub.f32 %v463_v57, %v471_v1 }
 0x27e   : >> { %v476_v3 = vmul.f32 1.442695, %v473_v2 }
 0x280   : >> { %986 = vpow2.f32 %v476_v3 }
 0x286   : >> { %v987_v4 = vpop.eup %986 }
 0x287   : >> { %893 = vmatmul.msk.f32.vlgmr.msra.gmra.mxu2 %vm363_vm1, %v987_v4  ;;  %v481_v5 = vsel %vm363_vm1, %v987_v4, 0.0  ;;  %vm671_vm1 = vcmask (%p390_p11), 458112  }
 0x288   : >> { %482 = vadd.xlane.f32.xlu2 %v481_v5 }
 0x2ed   : >> { %v480_v6 = vpop.xlane.xlu1 %479 }
 0x2ee   : >> { %988 = vrcp.f32 %v480_v6  ;;  %v527_v10 = vand.u32 2147483648, %v480_v6  ;;  %v525_v12 = vand.u32 2147483647, %v480_v6  ;;  %vm521_vm4 = vweird.f32 %v480_v6 }
 0x2f0   : >> { %v528_v15 = vor.u32 1.1754944e-38, %v527_v10  ;;  %vm526_vm6 = vcmp.eq.f32.partialorder %v525_v12, 8.507059e+37 }
 0x2f4   : >> { %v989_v7 = vpop.eup %988 }
 0x2f5   : >> { %v517_v8 = vmul.f32 %v989_v7, %v480_v6  ;;  %vm522_vm3 = vweird.f32 %v989_v7 }
 0x2f6   : >> { %vm523_vm5 = vmor %vm521_vm4, %vm522_vm3  ;;  %v510_v17 = vpop.f32.mrf.mxu1 }
 0x2f7   : >> { %v518_v9 = vsub.f32 1.0, %v517_v8 }
 0x2f9   : >> { %v519_v11 = vmul.f32 %v989_v7, %v518_v9 }
 0x2fb   : >> { %v520_v13 = vadd.f32 %v989_v7, %v519_v11  ;;  %v483_v14 = vpop.xlane.xlu2 %482 }
 0x2fc   : >> { %990 = vrcp.f32 %v483_v14  ;;  %v541_v23 = vand.u32 2147483648, %v483_v14  ;;  %v539_v25 = vand.u32 2147483647, %v483_v14  ;;  %vm535_vm8 = vweird.f32 %v483_v14 }
 0x2fd   : >> { %v524_v16 = vsel %vm523_vm5, %v989_v7, %v520_v13 }
 0x2fe   : >> { %v529_v18 = vsel %vm526_vm6, %v528_v15, %v524_v16  ;;  %v542_v27 = vor.u32 1.1754944e-38, %v541_v23  ;;  %vm540_vm10 = vcmp.eq.f32.partialorder %v539_v25, 8.507059e+37  ;;  %v702_v16 = vld [vmem:[%s1394_s2 + $0x38] sm:$0xff] (%p390_p11)  ;;  %v696_v25 = vld [vmem:[%s1394_s2 + $0x8] sm:$0xff] (%p390_p11) }
 0x2ff   : >> { %v544_v19 = vmul.f32 %v529_v18, %v510_v17  ;;  %895 = vmatpush.xpose.msk.msra.mxu0 (%p390_p11), %vm195_vm0, %v702_v16  ;;  %920 = vmatpush.xpose.msk.msra.mxu1 (%p390_p11), %vm195_vm0, %v702_v16  ;;  %v701_v17 = vld [vmem:[%s1394_s2 + $0x30] sm:$0xff] (%p390_p11)  ;;  %v700_v18 = vld [vmem:[%s1394_s2 + $0x28] sm:$0xff] (%p390_p11) }
 0x301   : >> { %548 = vst.msk [vmem:[%s547_s8] sm:$0xff] %vm436_vm2, %v544_v19  ;;  %v699_v19 = vld [vmem:[%s1394_s2 + $0x20] sm:$0xff] (%p390_p11) }
 0x302   : >> { %v991_v20 = vpop.eup %990 }
 0x303   : >> { %v531_v21 = vmul.f32 %v991_v20, %v483_v14  ;;  %vm536_vm7 = vweird.f32 %v991_v20  ;;  %896 = vmatpush.xpose.msk.msra.mxu0 (%p390_p11), %vm195_vm0, %v701_v17  ;;  %921 = vmatpush.xpose.msk.msra.mxu1 (%p390_p11), %vm195_vm0, %v701_v17 }
 0x304   : >> { %vm537_vm9 = vmor %vm535_vm8, %vm536_vm7 }
 0x305   : >> { %v532_v22 = vsub.f32 1.0, %v531_v21  ;;  %v698_v21 = vld [vmem:[%s1394_s2 + $0x18] sm:$0xff] (%p390_p11) }
 0x307   : >> { %v533_v24 = vmul.f32 %v991_v20, %v532_v22  ;;  %897 = vmatpush.xpose.msk.msra.mxu0 (%p390_p11), %vm195_vm0, %v700_v18  ;;  %922 = vmatpush.xpose.msk.msra.mxu1 (%p390_p11), %vm195_vm0, %v700_v18  ;;  %v697_v22 = vld [vmem:[%s1394_s2 + $0x10] sm:$0xff] (%p390_p11) }
 0x309   : >> { %v534_v26 = vadd.f32 %v991_v20, %v533_v24 }
 0x30a   : >> { %v513_v29 = vpop.f32.mrf.mxu2 }
 0x30b   : >> { %v538_v28 = vsel %vm537_vm9, %v991_v20, %v534_v26  ;;  %392 = sbr.rel (!%p390_p11) target bundleno = 205 (0xcd), region = 93  ;;  %898 = vmatpush.xpose.msk.msra.mxu0 (%p390_p11), %vm195_vm0, %v699_v19  ;;  %923 = vmatpush.xpose.msk.msra.mxu1 (%p390_p11), %vm195_vm0, %v699_v19 }
 0x30c   : >> { %v543_v30 = vsel %vm540_vm10, %v542_v27, %v538_v28  ;;  %v695_v27 = vld [vmem:[%s1394_s2] sm:$0xff] (%p390_p11) }
 0x30d   : >> { %v545_v31 = vmul.f32 %v543_v30, %v513_v29 }
 0x30f   : >> { %549 = vst.msk [vmem:[%s547_s8 + $0x8] sm:$0xff] %vm436_vm2, %v545_v31  ;;  %899 = vmatpush.xpose.msk.msra.mxu0 (%p390_p11), %vm195_vm0, %v698_v21  ;;  %924 = vmatpush.xpose.msk.msra.mxu1 (%p390_p11), %vm195_vm0, %v698_v21  ;;  %s1006_s8 = sshra.s32 (%p390_p11), %s774_s7, 4  ;;  %s1007_s8 = int_to_ptr.hbm [resolvable:$true] %s1006_s8 }
 0x310   : > { %p1013_p1 = scmp.lt.s32.totalorder %s1007_s8, %s1395_s3 }
 0x313   : > { %900 = vmatpush.xpose.msk.msra.mxu0 %vm195_vm0, %v697_v22  ;;  %925 = vmatpush.xpose.msk.msra.mxu1 %vm195_vm0, %v697_v22 }
 0x316   : > { %v580_v32 = vld [vmem:[#allocation3 + $0x2] ss:$8 sm:$0xf]  ;;  %v561_v35 = vld [vmem:[#allocation3 + $0x1] ss:$8 sm:$0xf] }
 0x317   : > { %v581_v33 = vld [vmem:[#allocation3 + $0x2] ss:$8 sm:$0xf0]  ;;  %v562_v36 = vld [vmem:[#allocation3 + $0x1] ss:$8 sm:$0xf0]  ;;  %901 = vmatpush.xpose.msk.msra.mxu0 %vm195_vm0, %v696_v25  ;;  %926 = vmatpush.xpose.msk.msra.mxu1 %vm195_vm0, %v696_v25 }
 0x318   : > { %v582_v34 = vor.u32 %v581_v33, %v580_v32  ;;  %v563_v37 = vor.u32 %v562_v36, %v561_v35  ;;  %v584_v38 = vld [vmem:[#allocation3 + $0x42] ss:$8 sm:$0xf]  ;;  %v565_v40 = vld [vmem:[#allocation3 + $0x41] ss:$8 sm:$0xf] }
 0x319   : > { %v585_v39 = vld [vmem:[#allocation3 + $0x42] ss:$8 sm:$0xf0]  ;;  %v566_v41 = vld [vmem:[#allocation3 + $0x41] ss:$8 sm:$0xf0] }
 0x31a   : > { %589 = vrot.lane.b32.xlu1 %v582_v34, %s1064_s9  ;;  %570 = vrot.lane.b32.xlu0 %v563_v37, %s1065_s10  ;;  %v586_v42 = vor.u32 %v585_v39, %v584_v38  ;;  %v567_v43 = vor.u32 %v566_v41, %v565_v40  ;;  %v599_v44 = vld [vmem:[#allocation3 + $0x3] ss:$8 sm:$0xf]  ;;  %v622_v47 = vld [vmem:[#allocation3 + $0x44] ss:$8 sm:$0xf] }
 0x31b   : > { %v600_v45 = vld [vmem:[#allocation3 + $0x3] ss:$8 sm:$0xf0]  ;;  %v623_v48 = vld [vmem:[#allocation3 + $0x44] ss:$8 sm:$0xf0]  ;;  %902 = vmatpush.xpose.msk.msra.mxu0 %vm195_vm0, %v695_v27  ;;  %927 = vmatpush.xpose.msk.msra.mxu1 %vm195_vm0, %v695_v27 }
 0x31c   : > { %v601_v46 = vor.u32 %v600_v45, %v599_v44  ;;  %v618_v49 = vld [vmem:[#allocation3 + $0x4] ss:$8 sm:$0xf]  ;;  %v603_v51 = vld [vmem:[#allocation3 + $0x43] ss:$8 sm:$0xf]  ;;  %v624_v53 = vor.u32 %v623_v48, %v622_v47 }
 0x31d   : > { %v619_v50 = vld [vmem:[#allocation3 + $0x4] ss:$8 sm:$0xf0]  ;;  %v604_v52 = vld [vmem:[#allocation3 + $0x43] ss:$8 sm:$0xf0] }
 0x31e   : > { %608 = vrot.lane.b32.xlu2 %v601_v46, %s1066_s11  ;;  %v620_v54 = vor.u32 %v619_v50, %v618_v49  ;;  %v605_v55 = vor.u32 %v604_v52, %v603_v51  ;;  %v656_v56 = vld [vmem:[#allocation3 + $0x6] ss:$8 sm:$0xf]  ;;  %v641_v58 = vld [vmem:[#allocation3 + $0x45] ss:$8 sm:$0xf] }
 0x31f   : > { %v657_v57 = vld [vmem:[#allocation3 + $0x6] ss:$8 sm:$0xf0]  ;;  %v642_v59 = vld [vmem:[#allocation3 + $0x45] ss:$8 sm:$0xf0] }
 0x320   : > { %v637_v60 = vld [vmem:[#allocation3 + $0x5] ss:$8 sm:$0xf]  ;;  %v658_v62 = vor.u32 %v657_v57, %v656_v56  ;;  %v643_v63 = vor.u32 %v642_v59, %v641_v58  ;;  %v679_v1 = vld [vmem:[#allocation3 + $0x47] ss:$8 sm:$0xf] }
 0x321   : > { %v638_v61 = vld [vmem:[#allocation3 + $0x5] ss:$8 sm:$0xf0]  ;;  %v680_v2 = vld [vmem:[#allocation3 + $0x47] ss:$8 sm:$0xf0] }
 0x322   : > { %591 = vrot.lane.b32.xlu1 %v586_v42, %s1064_s9  ;;  %572 = vrot.lane.b32.xlu0 %v567_v43, %s1065_s10  ;;  %v639_v0 = vor.u32 %v638_v61, %v637_v60  ;;  %v675_v3 = vld [vmem:[#allocation3 + $0x7] ss:$8 sm:$0xf]  ;;  %v660_v5 = vld [vmem:[#allocation3 + $0x46] ss:$8 sm:$0xf]  ;;  %v681_v7 = vor.u32 %v680_v2, %v679_v1 }
 0x323   : > { %v676_v4 = vld [vmem:[#allocation3 + $0x7] ss:$8 sm:$0xf0]  ;;  %v661_v6 = vld [vmem:[#allocation3 + $0x46] ss:$8 sm:$0xf0] }
 0x324   : > { %v677_v8 = vor.u32 %v676_v4, %v675_v3  ;;  %v662_v9 = vor.u32 %v661_v6, %v660_v5  ;;  %v550_v10 = vld [vmem:[#allocation3] ss:$8 sm:$0xf]  ;;  %s1008_s9 = scalar_lea.hbm %s1007_s8, 16 }
 0x325   : > { %v551_v11 = vld [vmem:[#allocation3] ss:$8 sm:$0xf0]  ;;  %p1009_p12 = scmp.ne.s32.totalorder %s1007_s8, %s1008_s9 }
 0x326   : > { %610 = vrot.lane.b32.xlu2 %v605_v55, %s1066_s11  ;;  %v552_v12 = vor.u32 %v551_v11, %v550_v10  ;;  %v554_v13 = vld [vmem:[#allocation3 + $0x40] ss:$8 sm:$0xf] }
 0x327   : > { %v555_v14 = vld [vmem:[#allocation3 + $0x40] ss:$8 sm:$0xf0]  ;;  %p1010_p13 = pnand %p1009_p12, %p1130_p5 }
 0x328   : > { %558 = vst.msk [vmem:[#allocation4] sm:$0xff] %vm436_vm2, %v552_v12  ;;  %v556_v15 = vor.u32 %v555_v14, %v554_v13 }
 0x329   : > { %p1011_p0 = pneg %p1010_p13 }
 0x32a   : > { %629 = vrot.lane.b32.xlu1 %v624_v53, %s1067_s17  ;;  %627 = vrot.lane.b32.xlu0 %v620_v54, %s1067_s17  ;;  %559 = vst.msk [vmem:[#allocation4 + $0x8] sm:$0xff] %vm436_vm2, %v556_v15  ;;  %vm690_vm2 = vcmask 523712   ;;  %s1012_s17 = scalar_lea.hbm %s1395_s3, 32 }
 0x32b   : > { %p1014_p2 = scmp.lt.s32.totalorder %s1012_s17, %s1008_s9 }
 0x32d   : > { %p1015_p3 = por %p1014_p2, %p1013_p1 }
 0x32e   : > { %646 = vrot.lane.b32.xlu2 %v639_v0, %s1069_s20 }
 0x32f   : > { %p1016_p4 = pnand %p1015_p3, %p1011_p0 }
 0x332   : > { %665 = vrot.lane.b32.xlu1 %v658_v62, %s1068_s19  ;;  %648 = vrot.lane.b32.xlu0 %v643_v63, %s1069_s20 }
 0x336   : > { %667 = vrot.lane.b32.xlu2 %v662_v9, %s1068_s19 }
 0x33a   : > { %686 = vrot.lane.b32.xlu1 %v681_v7, %s1070_s26  ;;  %684 = vrot.lane.b32.xlu0 %v677_v8, %s1070_s26 }
 0x378   : > { %v609_v20 = vpop.permute.xlu2 %608 }
 0x380   : > { %v611_v26 = vpop.permute.xlu2 %610 }
 0x388   : > { %v647_v30 = vpop.permute.xlu2 %646 }
 0x38c   : > { %v590_v23 = vpop.permute.xlu1 %589  ;;  %v571_v24 = vpop.permute.xlu0 %570 }
 0x38d   : > { %577 = vst.msk [vmem:[#allocation4] sm:$0xff] %vm576_vm11, %v571_v24 }
 0x38e   : > { %596 = vst.msk [vmem:[#allocation4] sm:$0xff] %vm595_vm12, %v590_v23 }
 0x38f   : > { %615 = vst.msk [vmem:[#allocation4] sm:$0xff] %vm614_vm13, %v609_v20 }
 0x390   : > { %v668_v34 = vpop.permute.xlu2 %667 }
 0x394   : > { %v592_v28 = vpop.permute.xlu1 %591  ;;  %v573_v29 = vpop.permute.xlu0 %572 }
 0x395   : > { %578 = vst.msk [vmem:[#allocation4 + $0x8] sm:$0xff] %vm576_vm11, %v573_v29 }
 0x396   : > { %597 = vst.msk [vmem:[#allocation4 + $0x8] sm:$0xff] %vm595_vm12, %v592_v28 }
 0x397   : > { %616 = vst.msk [vmem:[#allocation4 + $0x8] sm:$0xff] %vm614_vm13, %v611_v26 }
 0x39c   : > { %v630_v31 = vpop.permute.xlu1 %629  ;;  %v628_v32 = vpop.permute.xlu0 %627 }
 0x39d   : > { %635 = vst.msk [vmem:[#allocation4 + $0x8] sm:$0xff] %vm633_vm14, %v630_v31 }
 0x39e   : > { %634 = vst.msk [vmem:[#allocation4] sm:$0xff] %vm633_vm14, %v628_v32 }
 0x39f   : > { %653 = vst.msk [vmem:[#allocation4] sm:$0xff] %vm652_vm15, %v647_v30 }
 0x3a4   : > { %v666_v33 = vpop.permute.xlu1 %665  ;;  %v649_v35 = vpop.permute.xlu0 %648 }
 0x3a5   : > { %672 = vst.msk [vmem:[#allocation4] sm:$0xff] %vm671_vm1, %v666_v33 }
 0x3a6   : > { %654 = vst.msk [vmem:[#allocation4 + $0x8] sm:$0xff] %vm652_vm15, %v649_v35 }
 0x3a7   : > { %673 = vst.msk [vmem:[#allocation4 + $0x8] sm:$0xff] %vm671_vm1, %v668_v34 }
 0x3ac   : > { %v687_v36 = vpop.permute.xlu1 %686  ;;  %v685_v37 = vpop.permute.xlu0 %684 }
 0x3ad   : > { %692 = vst.msk [vmem:[#allocation4 + $0x8] sm:$0xff] %vm690_vm2, %v687_v36 }
 0x3ae   : > { %691 = vst.msk [vmem:[#allocation4] sm:$0xff] %vm690_vm2, %v685_v37 }
 0x3b4   : > { %v694_v38 = vld [vmem:[#allocation4 + $0x8] sm:$0xff] }
 0x3b5   : > { %904 = vmatmul.msk.f32.vlgmr.msra.gmra.mxu1 %vm195_vm0, %v694_v38  ;;  %v693_v39 = vld [vmem:[#allocation4] sm:$0xff] }
 0x3b6   : > { %903 = vmatmul.msk.f32.vlgmr.msra.gmra.mxu0 %vm195_vm0, %v693_v39 }
 0x432   : > { %v753_v40 = vpop.f32.mrf.mxu1 }
 0x433   : > { %757 = vst.msk [vmem:[%s1279_s4 + $0x8] sm:$0xff] %vm195_vm0, %v753_v40  ;;  %v750_v41 = vpop.f32.mrf.mxu0 }
 0x434   : > { %756 = vst.msk [vmem:[%s1279_s4] sm:$0xff] %vm195_vm0, %v750_v41 }
 0x435   : > { %1019 = shalt.err (!%p1016_p4)
}
 0x436   : > { %s1071_s24 = smov 128  }
 0x437   : > { %928 = dma.vmem_to_hbm [thread:$0]  (%p1130_p5), %s772_s6, 256, %s774_s7, %s759_s25, %s1071_s24, %s1071_s24, %s1065_s10  }
 0x438 PF: > { %p934_p7 = scmp.ge.s32.totalorder %s1058_s15, 2  ;;  %s788_s4 = sand.u32 1, %s1046_s12  }
 0x439   : > { %s789_s26 = scalar_lea.sflag [#allocation6], %s788_s4 }
 0x43a   : > { %p931_p8 = pnand %p934_p7, %p1134_p6 }
 0x43c   : > { %p932_p9 = pneg %p931_p8 }
 0x43e   : > { %1041 = dma.done.wait (%p932_p9), %s789_s26, 256  }
 0x43f   : > { %1043 = vsyncadd (%p932_p9), %s789_s26, 4294967040  ;;  %p13_p10 = scmp.ge.s32.totalorder %s1117_s18, 4   ;;  %s1398_s12 = smov %s1050_s13 }
 0x440   : > { %s1399_s13 = smov %s1054_s14  ;;  %s1400_s14 = smov %s1128_s21 }
 0x441   : > { %s1401_s15 = smov %s1117_s18  ;;  %15 = sbr.rel (!%p13_p10) target bundleno = 3 (0x3), region = 104 }
 0x446   :  { %795 = vsyncpa [#allocation6], 1 }
 0x447   :  { %797 = vsyncpa [#allocation6 + $0x1], 1 }

</bundles_post_ra>
